<compile_context>
chip_gen: v7x
topology: tpu7x:2x2x1
jax: 0.10.0
libtpu: 0.0.40
codegen_flags: <defaults>
</compile_context>

<pallas_src>
import functools
import math

import jax
import jax.numpy as jnp
from jax import lax
from jax.experimental import pallas as pl
from jax.experimental.pallas import tpu as pltpu


def _round_up(x, m):
    return ((x + m - 1) // m) * m


def _cdiv(a, b):
    return (a + b - 1) // b


# ---------------------------------------------------------------------------
# Pallas kernels: conv-as-matmul (transposed) + BN (inference affine) + activation
#   p_ref     : (K_pad, TM)      bf16   im2col patches (transposed), one M tile
#   w_ref     : (Cout_pad, K_pad) bf16  weights (BN scale folded in for non-relu path)
#   shift_ref : (Cout_pad, 1)     f32   BN shift
#   o_ref     : (Cout_pad, TM)    bf16  output tile (already NCHW-ordered)
# ---------------------------------------------------------------------------
def _stem_kernel_folded(p_ref, w_ref, shift_ref, o_ref, *, activation):
    """BN scale folded into weight rows: y = act(W_fold @ P^T + shift)."""
    acc = jnp.dot(w_ref[...], p_ref[...], preferred_element_type=jnp.float32)
    y = acc + shift_ref[...]
    if activation == "htanh":
        y = jnp.clip(y, -1.0, 1.0)
    o_ref[...] = y.astype(o_ref.dtype)


def _stem_kernel_relu(p_ref, w_ref, scale_ref, shift_ref, o_ref):
    """'relu' path: ReLU sits between conv and BN, so scale cannot be folded."""
    acc = jnp.dot(w_ref[...], p_ref[...], preferred_element_type=jnp.float32)
    acc = jnp.maximum(acc, 0.0)
    y = acc * scale_ref[...] + shift_ref[...]
    o_ref[...] = y.astype(o_ref.dtype)


def stem_forward(x_nchw, conv_w, gamma, beta, running_mean, running_var,
                 *, stride=2, pad=1, eps=1e-5, activation="htanh", tm_max=8192):
    """Stem: Conv2d(bias=False, k=3, s=2, p=1) + BatchNorm2d (eval) + activation.

    activation: 'htanh' (Hardtanh after BN), 'relu' (ReLU before BN), anything else
    (e.g. the Stem default 'tanh', which adds no activation module) -> conv+BN only.

    x_nchw : (N, Cin, H, W) f32 (PyTorch NCHW);  conv_w : (Cout, Cin, KH, KW) OIHW.
    returns (N, Cout, Ho, Wo) bf16 (downstream NAS cells consume bf16).
    """
    N, Cin, H, W = x_nchw.shape
    Cout, _, KH, KW = conv_w.shape
    Ho = (H + 2 * pad - KH) // stride + 1
    Wo = (W + 2 * pad - KW) // stride + 1
    K = Cin * KH * KW
    Msp = Ho * Wo                              # spatial positions per image

    # ---- padded/tiling geometry ------------------------------------------------
    K_pad = _round_up(K, 32)                   # contraction dim (27 -> 32), sublanes
    Cout_pad = _round_up(Cout, 8)              # output sublane dim (usually no pad)
    TM = min(tm_max, _round_up(Msp, 128))      # lane tile over spatial positions
    # v7x: keep the 1-D-per-image grid from collapsing to a single program
    if N * _cdiv(_round_up(Msp, 128), TM) < 2 and Msp > 128:
        TM = max(128, _round_up(_cdiv(Msp, 2), 128))
    M_pad = _round_up(Msp, TM)

    # ---- wrapper glue (plain JAX), NCHW-native, bf16 early ----------------------
    x_bf16 = x_nchw.astype(jnp.bfloat16)
    x_padded = jnp.pad(x_bf16, ((0, 0), (0, 0), (pad, pad), (pad, pad)))
    taps = []
    for kh in range(KH):
        for kw in range(KW):
            taps.append(x_padded[:, :, kh:kh + stride * Ho:stride,
                                       kw:kw + stride * Wo:stride])   # (N, Cin, Ho, Wo)
    # K ordered (cin, kh, kw) to match conv_w.reshape(Cout, Cin*KH*KW)
    patches = jnp.stack(taps, axis=2).reshape(N, K, Msp)              # (N, K, Ho*Wo)
    patches_p = jnp.pad(patches, ((0, 0), (0, K_pad - K), (0, M_pad - Msp)))

    # weight (Cout, Cin, KH, KW) -> (Cout, K); fold eval-mode BN where legal
    w_mat = conv_w.reshape(Cout, K).astype(jnp.float32)
    inv_std = lax.rsqrt(running_var.astype(jnp.float32) + eps)
    scale = gamma.astype(jnp.float32) * inv_std
    shift = beta.astype(jnp.float32) - running_mean.astype(jnp.float32) * scale

    fold_scale = (activation != "relu")
    w_eff = w_mat * scale[:, None] if fold_scale else w_mat
    w_p = jnp.pad(w_eff, ((0, Cout_pad - Cout), (0, K_pad - K))).astype(jnp.bfloat16)
    shift_p = jnp.pad(shift, (0, Cout_pad - Cout)).reshape(Cout_pad, 1)
    scale_p = jnp.pad(scale, (0, Cout_pad - Cout)).reshape(Cout_pad, 1)

    grid = (N, M_pad // TM)
    cost = pl.CostEstimate(
        flops=2 * N * Cout_pad * K_pad * M_pad,
        transcendentals=0,
        bytes_accessed=(N * K_pad * M_pad * 2 + Cout_pad * K_pad * 2
                        + 2 * Cout_pad * 4 + N * Cout_pad * M_pad * 2),
    )
    compiler_params = pltpu.CompilerParams(
        dimension_semantics=("parallel", "parallel"),   # shards across TCs on v7x
        vmem_limit_bytes=32 * 1024 * 1024,
    )
    common = dict(
        out_shape=jax.ShapeDtypeStruct((N, Cout_pad, M_pad), jnp.bfloat16),
        grid=grid,
        out_specs=pl.BlockSpec((None, Cout_pad, TM), lambda n, i: (n, 0, i)),
        compiler_params=compiler_params,
        cost_estimate=cost,
    )

    if fold_scale:
        out_flat = pl.pallas_call(
            functools.partial(_stem_kernel_folded, activation=activation),
            in_specs=[
                pl.BlockSpec((None, K_pad, TM), lambda n, i: (n, 0, i)),
                pl.BlockSpec((Cout_pad, K_pad), lambda n, i: (0, 0)),
                pl.BlockSpec((Cout_pad, 1), lambda n, i: (0, 0)),
            ],
            **common,
        )(patches_p, w_p, shift_p)
    else:
        out_flat = pl.pallas_call(
            _stem_kernel_relu,
            in_specs=[
                pl.BlockSpec((None, K_pad, TM), lambda n, i: (n, 0, i)),
                pl.BlockSpec((Cout_pad, K_pad), lambda n, i: (0, 0)),
                pl.BlockSpec((Cout_pad, 1), lambda n, i: (0, 0)),
                pl.BlockSpec((Cout_pad, 1), lambda n, i: (0, 0)),
            ],
            **common,
        )(patches_p, w_p, scale_p, shift_p)

    # (N, Cout_pad, M_pad) is already NCHW-ordered: strip padding + reshape only.
    return out_flat[:, :Cout, :Msp].reshape(N, Cout, Ho, Wo)


def network_forward(x_nchw, params, *, activation="htanh"):
    """Partial Network.forward: s0 = s1 = Stem(x) via the Pallas kernel above."""
    s1 = stem_forward(
        x_nchw,
        params["stem_conv_w"],
        params["bn_gamma"], params["bn_beta"],
        params["bn_mean"], params["bn_var"],
        activation=activation,
    )
    # TODO(synk): NAS cells loop (NetConstructor/Bnas), BinASPP, LastLayer and the
    # Bilinear upsample are not translatable — their class definitions were not
    # provided in the reference module.
    return s1


# ---------------------------------------------------------------------------
# Pure-JAX f32 reference (sanity check)
# ---------------------------------------------------------------------------
def _stem_reference(x_nchw, conv_w, gamma, beta, mean, var,
                    *, stride=2, pad=1, eps=1e-5, activation="htanh"):
    conv = lax.conv_general_dilated(
        x_nchw, conv_w, window_strides=(stride, stride),
        padding=((pad, pad), (pad, pad)),
        dimension_numbers=("NCHW", "OIHW", "NCHW"),
        precision=lax.Precision.HIGHEST)
    if activation == "relu":
        conv = jnp.maximum(conv, 0.0)
    scale = (gamma / jnp.sqrt(var + eps)).reshape(1, -1, 1, 1)
    shift = (beta - mean * gamma / jnp.sqrt(var + eps)).reshape(1, -1, 1, 1)
    y = conv * scale + shift
    if activation == "htanh":
        y = jnp.clip(y, -1.0, 1.0)
    return y


if __name__ == "__main__":
    # Small, deterministic configuration consistent with the module:
    #   batch=2, in_channels=3 (Stem default), image 16x16, stem_channels=32,
    #   first_layer_activation='htanh', eval-mode running BN stats.
    key = jax.random.PRNGKey(0)
    k_x, k_w, k_g, k_b, k_m, k_v = jax.random.split(key, 6)

    N, Cin, H, W = 2, 3, 16, 16
    Cout = 32

    x = jax.random.normal(k_x, (N, Cin, H, W), dtype=jnp.float32)
    params = {
        "stem_conv_w": 0.3 * jax.random.normal(k_w, (Cout, Cin, 3, 3), jnp.float32),
        "bn_gamma": 1.0 + 0.1 * jax.random.normal(k_g, (Cout,), jnp.float32),
        "bn_beta": 0.1 * jax.random.normal(k_b, (Cout,), jnp.float32),
        "bn_mean": 0.05 * jax.random.normal(k_m, (Cout,), jnp.float32),
        "bn_var": jnp.abs(1.0 + 0.1 * jax.random.normal(k_v, (Cout,), jnp.float32)),
    }

    out = jax.jit(network_forward)(x, params)
    out = jax.block_until_ready(out)
    assert out.shape == (N, Cout, H // 2, W // 2), out.shape

    ref = _stem_reference(x, params["stem_conv_w"], params["bn_gamma"],
                          params["bn_beta"], params["bn_mean"], params["bn_var"])
    # Kernel uses bf16 operands + bf16 output (f32 MXU accumulation / epilogue), so
    # compare against the f32 reference at bf16-level tolerance.
    out_f32 = out.astype(jnp.float32)
    err = float(jnp.max(jnp.abs(out_f32 - ref)))
    assert jnp.allclose(out_f32, ref, rtol=5e-2, atol=5e-2), err

    print("KERNEL_OK")
</pallas_src>

<mosaic_0001>
module attributes {stable_mosaic.version = 11 : i64} {
  func.func @_stem_kernel_folded(%arg0: i32, %arg1: i32, %arg2: memref<1x32x128xbf16, #tpu.memory_space<vmem>>, %arg3: memref<32x32xbf16, #tpu.memory_space<vmem>>, %arg4: memref<32x1xf32, #tpu.memory_space<vmem>>, %arg5: memref<1x32x128xbf16, #tpu.memory_space<vmem>>) attributes {dimension_semantics = [#tpu.dimension_semantics<parallel>, #tpu.dimension_semantics<parallel>], iteration_bounds = array<i64: 2, 1>, scalar_prefetch = 0 : i64, scratch_operands = 0 : i64, tpu.core_type = #tpu.core_type<tc>, window_params = [{transform_indices = @transform_0, window_bounds = array<i64: 1, 32, 128>}, {pipeline_mode = #tpu.pipeline_mode<synchronous>, transform_indices = @transform_1, window_bounds = array<i64: 32, 32>}, {pipeline_mode = #tpu.pipeline_mode<synchronous>, transform_indices = @transform_2, window_bounds = array<i64: 32, 1>}, {transform_indices = @transform_3, window_bounds = array<i64: 1, 32, 128>}]} {
    %c0 = arith.constant 0 : index
    %c0_0 = arith.constant 0 : index
    %0 = vector.load %arg3[%c0, %c0_0] : memref<32x32xbf16, #tpu.memory_space<vmem>>, vector<32x32xbf16>
    %c0_1 = arith.constant 0 : index
    %c0_2 = arith.constant 0 : index
    %c0_3 = arith.constant 0 : index
    %1 = vector.load %arg2[%c0_1, %c0_2, %c0_3] : memref<1x32x128xbf16, #tpu.memory_space<vmem>>, vector<1x32x128xbf16>
    %2 = vector.shape_cast %1 : vector<1x32x128xbf16> to vector<32x128xbf16>
    %cst = arith.constant dense<0.000000e+00> : vector<32x128xf32>
    %3 = tpu.matmul %0, %2, %cst {dimension_numbers = #tpu.dot_dimension_numbers<[1], [0], [0], [1], [0, 0, 1, 1], [], []>} : vector<32x32xbf16>, vector<32x128xbf16>, vector<32x128xf32> -> vector<32x128xf32>
    %c0_4 = arith.constant 0 : index
    %c0_5 = arith.constant 0 : index
    %4 = vector.load %arg4[%c0_4, %c0_5] : memref<32x1xf32, #tpu.memory_space<vmem>>, vector<32x1xf32>
    %5 = vector.broadcast %4 : vector<32x1xf32> to vector<32x128xf32>
    %6 = arith.addf %3, %5 : vector<32x128xf32>
    %cst_6 = arith.constant -1.000000e+00 : f32
    %cst_7 = arith.constant 1.000000e+00 : f32
    %7 = vector.broadcast %cst_6 : f32 to vector<32x128xf32>
    %8 = arith.maximumf %7, %6 : vector<32x128xf32>
    %9 = vector.broadcast %cst_7 : f32 to vector<32x128xf32>
    %10 = arith.minimumf %9, %8 : vector<32x128xf32>
    %11 = arith.truncf %10 : vector<32x128xf32> to vector<32x128xbf16>
    %c0_8 = arith.constant 0 : index
    %c0_9 = arith.constant 0 : index
    %c0_10 = arith.constant 0 : index
    %12 = vector.load %arg5[%c0_8, %c0_9, %c0_10] : memref<1x32x128xbf16, #tpu.memory_space<vmem>>, vector<1x32x128xbf16>
    %13 = vector.shape_cast %12 : vector<1x32x128xbf16> to vector<32x128xbf16>
    %14 = vector.shape_cast %11 : vector<32x128xbf16> to vector<1x32x128xbf16>
    tpu.vector_store %arg5[%c0_8, %c0_9, %c0_10], %14 {strides = array<i32>} : memref<1x32x128xbf16, #tpu.memory_space<vmem>>, vector<1x32x128xbf16>,
    return
  }
  func.func @transform_0(%arg0: i32, %arg1: i32) -> (i32, i32, i32) {
    %c0_i32 = arith.constant 0 : i32
    %c0_i32_0 = arith.constant 0 : i32
    return %arg0, %c0_i32, %arg1 : i32, i32, i32
  }
  func.func @transform_1(%arg0: i32, %arg1: i32) -> (i32, i32) {
    %c0_i32 = arith.constant 0 : i32
    %c0_i32_0 = arith.constant 0 : i32
    %c0_i32_1 = arith.constant 0 : i32
    return %c0_i32, %c0_i32_0 : i32, i32
  }
  func.func @transform_2(%arg0: i32, %arg1: i32) -> (i32, i32) {
    %c0_i32 = arith.constant 0 : i32
    %c0_i32_0 = arith.constant 0 : i32
    %c0_i32_1 = arith.constant 0 : i32
    return %c0_i32, %c0_i32_0 : i32, i32
  }
  func.func @transform_3(%arg0: i32, %arg1: i32) -> (i32, i32, i32) {
    %c0_i32 = arith.constant 0 : i32
    %c0_i32_0 = arith.constant 0 : i32
    return %arg0, %c0_i32, %arg1 : i32, i32, i32
  }
}

</mosaic_0001>

<bundles_post_ra>
// kernel: network_forward.1
= control target key start
LH: loop header
LB: loop body
LE: loop exit
PB: predicated region body
PF: predicated region fallthrough
CT: control target
= control target key end

     0   :  { %s554_s12 = smov 0   ;;  %s556_s13 = smov 0   ;;  %s614_s0 = inlined_call_operand.vmem [shape: bf16[2,32,128], index: 0, kind: input, shape index: {}]   ;;  %s615_s1 = inlined_call_operand.vmem [shape: bf16[32,32], index: 1, kind: input, shape index: {}]   ;;  %s616_s2 = inlined_call_operand.vmem [shape: f32[32,1], index: 2, kind: input, shape index: {}]   ;;  %s617_s3 = inlined_call_operand.vmem [shape: bf16[2,32,128], index: 3, kind: output, shape index: {}]  }
   0x1   :  { %s558_s14 = smov 0  }
   0x2 LB: > { %s25_s15 = sadd.s32 1, %s527_s13  ;;  %p428_p0 = scmp.ge.s32.totalorder %s531_s14, 1  ;;  %s531_s14 = sphi %s558_s14, %s13_s14   ;;  %s527_s13 = sphi %s556_s13, %s619_s13   ;;  %s523_s12 = sphi %s554_s12, %s618_s12  }
   0x3   : > { %p27_p1 = scmp.ge.s32.totalorder %s25_s15, 2  ;;  %p156_p2 = scmp.lt.s32.totalorder %s531_s14, 3 }
   0x5   : > { %s621_s15 = smov (%p27_p1, %s25_s15), 0  ;;  %p157_p3 = pnand %p428_p0, %p156_p2 }
   0x6   : > { %p186_p4 = scmp.lt.s32.totalorder (!%p157_p3), %s523_s12, 1  ;;  %v507_v0 = vld [vmem:[%s615_s1] sm:$0xff] (!%p157_p3)   ;;  %vm257_vm0 = vcmask (!%p157_p3), 261120   ;;  %v213_v1 = vld [vmem:[%s616_s2 + $0x10] sm:$0xff] (!%p157_p3)  ;;  %v533_v3 = vmov (!%p157_p3), 0   ;;  %v214_v4 = vld [vmem:[%s616_s2 + $0x18] sm:$0xff] (!%p157_p3) }
   0x7   : > { %160 = sbr.rel (%p157_p3) target bundleno = 248 (0xf8), region = 32  ;;  %474 = vmatprep.mubr.msk.bf16.mxu0 (!%p157_p3), %vm257_vm0, %v507_v0  ;;  %v211_v2 = vld [vmem:[%s616_s2] sm:$0xff] (!%p157_p3)  ;;  %504 = vset.pattern.permute.xlu1 (!%p157_p3), %v533_v3  ;;  %v212_v5 = vld [vmem:[%s616_s2 + $0x8] sm:$0xff] (!%p157_p3) }
   0x8   : > { %503 = vset.pattern.permute.xlu0 (!%p157_p3), %v533_v3  ;;  %227 = vperm.xlu1 (!%p157_p3), %504, %v213_v1   ;;  %v508_v8 = vld [vmem:[%s615_s1 + $0x8] sm:$0xff] (!%p157_p3)  }
   0x9   : > { %217 = vperm.xlu0 (!%p157_p3), %503, %v211_v2  }
   0xc   : > { %232 = vperm.xlu1 (!%p157_p3), %504, %v214_v4  }
   0xd   : > { %222 = vperm.xlu0 (!%p157_p3), %503, %v212_v5  }
   0xe   : > { %s623_s12 = smov (!%p186_p4, %s523_s12), 1 }
   0xf   : > { %s449_s22 = sshll.u32 %s623_s12, 4 }
  0x10   : > { %s193_s25 = scalar_lea.vmem %s614_s0, %s449_s22  ;;  %s201_s7 = scalar_lea.vmem %s617_s3, %s449_s22 }
  0x11   : > { %v505_v6 = vld [vmem:[%s193_s25] sm:$0xff]   ;;  %v506_v7 = vld [vmem:[%s193_s25 + $0x8] sm:$0xff]  }
  0x12   : > { %470 = vmatprep.subr.bf16.mxu0 %v505_v6 }
  0x13   : > { %471 = vmatpush3.bf16.msra.mxu0 %v505_v6 }
  0x14   : > { %472 = vmatprep.subr.bf16.mxu0 %v506_v7 }
  0x17   : > { %473 = vmatpush3.bf16.msra.mxu0 %v506_v7 }
  0x1a   : > { %475 = vmatmul.mubr.msk.bf16.vlgmr.msra.gmra.mrb[0].mxu0 %vm257_vm0, %v508_v8 }
  0x87   : > { %v228_v9 = vpop.permute.xlu1 %227 }
  0x88   : > { %v218_v10 = vpop.permute.xlu0 %217 }
  0x8b   : > { %v233_v14 = vpop.permute.xlu1 %232 }
  0x8c   : > { %v223_v17 = vpop.permute.xlu0 %222 }
  0xed   : > { %v476_v11 = vpop.f32.mrb[0].mxu0 }
  0xee   : > { %v307_v12 = vadd.f32 %v476_v11, %v228_v9  ;;  %v298_v13 = vpop.f32.mrb[1].mxu0 }
  0xef   : > { %v299_v15 = vadd.f32 %v298_v13, %v218_v10  ;;  %v477_v16 = vpop.f32.mrb[2].mxu0 }
  0xf0   : > { %v310_v18 = vadd.f32 %v477_v16, %v233_v14  ;;  %v301_v19 = vpop.f32.mrb[3].mxu0  ;;  %v441_v21 = vclamps-f32 %v307_v12, 1.0 }
  0xf1   : > { %v302_v20 = vadd.f32 %v301_v19, %v223_v17  ;;  %v439_v23 = vclamps-f32 %v299_v15, 1.0 }
  0xf2   : > { %v442_v22 = vclamps-f32 %v310_v18, 1.0 }
  0xf3   : > { %v440_v24 = vclamps-f32 %v302_v20, 1.0 }
  0xf4   : > { %v463_v25 = vpack.c.bf16 %v442_v22, %v441_v21 }
  0xf5   : > { %v458_v26 = vpack.c.bf16 %v440_v24, %v439_v23 }
  0xf6   : > { %465 = vst [vmem:[%s201_s7 + $0x8] sm:$0xff] %v463_v25  }
  0xf7   : > { %459 = vst [vmem:[%s201_s7] sm:$0xff] %v458_v26  }
  0xf8 PF: > { %s13_s14 = sadd.s32 1, %s531_s14   ;;  %s618_s12 = smov %s527_s13 }
  0xf9   : > { %p10_p5 = scmp.ge.s32.totalorder %s13_s14, 4   ;;  %s619_s13 = smov %s621_s15 }
  0xfb   :  { %12 = sbr.rel (!%p10_p5) target bundleno = 2 (0x2), region = 62 }

</bundles_post_ra>
